<compile_context>
chip_gen: v6e
topology: v6e:2x2x1
jax: 0.10.0
libtpu: 0.0.40
codegen_flags: <defaults>
</compile_context>

<pallas_src>
import functools

import jax
import jax.numpy as jnp
from jax.experimental import pallas as pl
from jax.experimental.pallas import tpu as pltpu


_LANE = 512                          # preferred lane (last-dim) block width
_TARGET_BLOCK_BYTES = 4 * 1024 * 1024  # ~4 MiB f32 per input block


def _mape_kernel(f_ref, t_ref, m_ref, out_ref, acc_ref, *,
                 n_rows, n_cols, blocks_per_split, inv_n,
                 need_row_mask, need_col_mask):
    i = pl.program_id(1)   # row-block index within this core's split
    j = pl.program_id(2)   # col-block index

    @pl.when(jnp.logical_and(i == 0, j == 0))
    def _init():
        acc_ref[...] = jnp.zeros_like(acc_ref)

    blk_r, blk_c = f_ref.shape

    f = f_ref[...].astype(jnp.float32)
    t = t_ref[...].astype(jnp.float32)
    m = m_ref[...].astype(jnp.float32)

    # divide_no_nan: w = mask / target with NaN -> 0 and +inf -> 0 (-inf kept,
    # exactly like the torch reference).  `w < inf` is False only for NaN/+inf.
    w = m / t
    w = jnp.where(w < jnp.inf, w, jnp.float32(0.0))
    loss = jnp.abs((f - t) * w)

    # Zero out-of-bounds elements of ragged-edge / clamped-duplicate blocks
    # with a *select* (not a multiply: OOB garbage may be NaN and 0*NaN=NaN).
    valid = None
    if need_row_mask:
        c = pl.program_id(0)
        row0 = (c * blocks_per_split + i) * blk_r          # UNclamped assignment
        rows = row0 + jax.lax.broadcasted_iota(jnp.int32, (blk_r, blk_c), 0)
        valid = rows < n_rows
    if need_col_mask:
        cols = j * blk_c + jax.lax.broadcasted_iota(jnp.int32, (blk_r, blk_c), 1)
        cmask = cols < n_cols
        valid = cmask if valid is None else jnp.logical_and(valid, cmask)
    if valid is not None:
        loss = jnp.where(valid, loss, jnp.float32(0.0))

    # Fold into the per-core accumulator with pure VPU (sublane-group) adds;
    # the single cross-lane (XLU) reduce happens once per core, on the last step.
    acc_rows = acc_ref.shape[0]
    if blk_r == acc_rows:
        acc_ref[...] += loss
    else:
        acc_ref[...] += loss.reshape(blk_r // acc_rows, acc_rows, blk_c).sum(axis=0)

    last = jnp.logical_and(i == pl.num_programs(1) - 1,
                           j == pl.num_programs(2) - 1)

    @pl.when(last)
    def _finalize():
        partial = jnp.sum(acc_ref[...]) * jnp.float32(inv_n)
        out_ref[...] = jnp.full(out_ref.shape, partial, dtype=jnp.float32)


def mape_loss(insample, freq, forecast, target, mask):
    """JAX/Pallas equivalent of the PyTorch mape_loss.forward.

    insample and freq are accepted for signature fidelity but unused
    (exactly as in the PyTorch module).  Returns a scalar float32.
    """
    del insample, freq  # unused in the reference forward

    assert forecast.shape == target.shape == mask.shape
    n = int(forecast.size)
    if n == 0:
        return jnp.float32(jnp.nan)  # torch.mean of an empty tensor
    inv_n = 1.0 / float(n)

    # ---- choose a 2-D view using *free* reshapes only (no padding copies) ----
    if n % _LANE == 0:
        R, C = n // _LANE, _LANE              # lane-dense flattened view
    else:
        C = forecast.shape[-1]
        R = n // C                            # native (batch, time) view
    f2d = forecast.reshape(R, C)
    t2d = target.reshape(R, C)
    m2d = mask.reshape(R, C)

    # ---- block shape (last dim multiple of 128 or the full dim) ----
    if C <= _LANE or (C % 128 == 0 and C <= 4 * _LANE):
        block_c = C                           # full last dim: always legal
    else:
        block_c = _LANE                       # 512-lane blocks; ragged edge masked
    col_blocks = pl.cdiv(C, block_c)

    rows_budget = max(8, (_TARGET_BLOCK_BYTES // (4 * block_c)) // 8 * 8)
    block_r = R if R <= rows_budget else rows_budget
    row_blocks = pl.cdiv(R, block_r)

    # ---- shard row-blocks across (up to) two TensorCores (v7x megacore) ----
    num_splits = 2 if row_blocks >= 2 else 1
    blocks_per_split = pl.cdiv(row_blocks, num_splits)

    need_row_mask = num_splits * blocks_per_split * block_r > R
    need_col_mask = col_blocks * block_c > C

    acc_rows = 8 if block_r % 8 == 0 else block_r

    # Clamp the row-block index so a duplicated tail block (odd split) re-uses
    # the already-fetched last block (no extra DMA); its rows are masked to 0.
    in_spec = pl.BlockSpec(
        (block_r, block_c),
        lambda c, i, j: (jnp.minimum(c * blocks_per_split + i, row_blocks - 1), j),
    )
    out_spec = pl.BlockSpec((1, 8, 128), lambda c, i, j: (c, 0, 0))

    grid = (num_splits, blocks_per_split, col_blocks)

    out = pl.pallas_call(
        functools.partial(
            _mape_kernel,
            n_rows=R, n_cols=C, blocks_per_split=blocks_per_split, inv_n=inv_n,
            need_row_mask=need_row_mask, need_col_mask=need_col_mask),
        out_shape=jax.ShapeDtypeStruct((num_splits, 8, 128), jnp.float32),
        grid_spec=pltpu.PrefetchScalarGridSpec(
            num_scalar_prefetch=0,
            grid=grid,
            in_specs=[in_spec, in_spec, in_spec],
            out_specs=out_spec,
            scratch_shapes=[pltpu.VMEM((acc_rows, block_c), jnp.float32)],
        ),
        compiler_params=pltpu.CompilerParams(
            dimension_semantics=("parallel", "arbitrary", "arbitrary"),
            vmem_limit_bytes=40 * 1024 * 1024,
        ),
    )(f2d, t2d, m2d)

    # One partial (already divided by the global N) per core; sum outside.
    return jnp.sum(out[:, 0, 0])


def _reference(forecast, target, mask):
    # pure-JAX reference for sanity checking
    w = mask / target
    w = jnp.where(jnp.isnan(w), 0.0, w)
    w = jnp.where(w == jnp.inf, 0.0, w)
    return jnp.mean(jnp.abs((forecast - target) * w))


def _make_inputs(key, B, T):
    k1, k2, k3, k4 = jax.random.split(key, 4)
    forecast = jax.random.normal(k1, (B, T), dtype=jnp.float32)
    target = jax.random.normal(k2, (B, T), dtype=jnp.float32)
    # inject zeros into target to exercise the divide_no_nan path
    zero_sites = jax.random.bernoulli(k3, 0.1, (B, T))
    target = jnp.where(zero_sites, 0.0, target)
    mask = jax.random.bernoulli(k4, 0.8, (B, T)).astype(jnp.float32)
    return forecast, target, mask


if __name__ == "__main__":
    # --- small test: single block, single core-split ------------------------
    B, T = 8, 128
    forecast, target, mask = _make_inputs(jax.random.PRNGKey(0), B, T)
    insample = jnp.zeros((B, 2 * T), dtype=jnp.float32)  # unused, like PyTorch
    freq = 1                                             # unused, like PyTorch

    loss = jax.block_until_ready(mape_loss(insample, freq, forecast, target, mask))
    ref = jax.block_until_ready(_reference(forecast, target, mask))
    assert jnp.isfinite(loss), f"loss is not finite: {loss}"
    assert jnp.allclose(loss, ref, rtol=1e-5, atol=1e-6), f"{loss} vs {ref}"

    # --- ragged columns: T=1000 -> two 512-lane col blocks, tail masked -----
    B2, T2 = 600, 1000
    f2, t2, m2 = _make_inputs(jax.random.PRNGKey(1), B2, T2)
    ins2 = jnp.zeros((B2, 2 * T2), dtype=jnp.float32)

    loss2 = jax.block_until_ready(mape_loss(ins2, 1, f2, t2, m2))
    ref2 = jax.block_until_ready(_reference(f2, t2, m2))
    assert jnp.isfinite(loss2), f"loss2 is not finite: {loss2}"
    assert jnp.allclose(loss2, ref2, rtol=2e-4, atol=1e-6), f"{loss2} vs {ref2}"

    # --- multi-block rows: exercises the 2-way core split, the clamped
    #     duplicate tail block and the ragged last row block ------------------
    B3, T3 = 4100, 512
    f3, t3, m3 = _make_inputs(jax.random.PRNGKey(2), B3, T3)
    ins3 = jnp.zeros((B3, 2 * T3), dtype=jnp.float32)

    loss3 = jax.block_until_ready(mape_loss(ins3, 1, f3, t3, m3))
    ref3 = jax.block_until_ready(_reference(f3, t3, m3))
    assert jnp.isfinite(loss3), f"loss3 is not finite: {loss3}"
    assert jnp.allclose(loss3, ref3, rtol=5e-4, atol=1e-6), f"{loss3} vs {ref3}"

    print("KERNEL_OK")
</pallas_src>

<mosaic_0001>
module attributes {stable_mosaic.version = 11 : i64} {
  func.func @_mape_kernel(%arg0: i32, %arg1: i32, %arg2: i32, %arg3: memref<2x512xf32, #tpu.memory_space<vmem>>, %arg4: memref<2x512xf32, #tpu.memory_space<vmem>>, %arg5: memref<2x512xf32, #tpu.memory_space<vmem>>, %arg6: memref<1x8x128xf32, #tpu.memory_space<vmem>>, %arg7: memref<2x512xf32, #tpu.memory_space<vmem>>) attributes {dimension_semantics = [#tpu.dimension_semantics<parallel>, #tpu.dimension_semantics<arbitrary>, #tpu.dimension_semantics<arbitrary>], iteration_bounds = array<i64: 1, 1, 1>, scalar_prefetch = 0 : i64, scratch_operands = 1 : i64, tpu.core_type = #tpu.core_type<tc>, window_params = [{transform_indices = @transform_0, window_bounds = array<i64: 2, 512>}, {transform_indices = @transform_1, window_bounds = array<i64: 2, 512>}, {transform_indices = @transform_2, window_bounds = array<i64: 2, 512>}, {transform_indices = @transform_3, window_bounds = array<i64: 1, 8, 128>}]} {
    %c0_i32 = arith.constant 0 : i32
    %0 = arith.cmpi eq, %arg1, %c0_i32 : i32
    %c0_i32_0 = arith.constant 0 : i32
    %1 = arith.cmpi eq, %arg2, %c0_i32_0 : i32
    %2 = arith.andi %0, %1 : i1
    %3 = arith.extui %2 : i1 to i32
    %c0_i32_1 = arith.constant 0 : i32
    %4 = arith.cmpi ne, %3, %c0_i32_1 : i32
    scf.if %4 {
      %cst_15 = arith.constant 0.000000e+00 : f32
      %24 = vector.broadcast %cst_15 : f32 to vector<2x512xf32>
      %c0_16 = arith.constant 0 : index
      %c0_17 = arith.constant 0 : index
      %25 = vector.load %arg7[%c0_16, %c0_17] : memref<2x512xf32, #tpu.memory_space<vmem>>, vector<2x512xf32>
      tpu.vector_store %arg7[%c0_16, %c0_17], %24 {strides = array<i32>} : memref<2x512xf32, #tpu.memory_space<vmem>>, vector<2x512xf32>,
    } else {
    }
    %c0 = arith.constant 0 : index
    %c0_2 = arith.constant 0 : index
    %5 = vector.load %arg3[%c0, %c0_2] : memref<2x512xf32, #tpu.memory_space<vmem>>, vector<2x512xf32>
    %c0_3 = arith.constant 0 : index
    %c0_4 = arith.constant 0 : index
    %6 = vector.load %arg4[%c0_3, %c0_4] : memref<2x512xf32, #tpu.memory_space<vmem>>, vector<2x512xf32>
    %c0_5 = arith.constant 0 : index
    %c0_6 = arith.constant 0 : index
    %7 = vector.load %arg5[%c0_5, %c0_6] : memref<2x512xf32, #tpu.memory_space<vmem>>, vector<2x512xf32>
    %8 = arith.divf %7, %6 : vector<2x512xf32>
    %cst = arith.constant 0x7F800000 : f32
    %9 = vector.broadcast %cst : f32 to vector<2x512xf32>
    %10 = arith.cmpf olt, %8, %9 : vector<2x512xf32>
    %cst_7 = arith.constant 0.000000e+00 : f32
    %11 = vector.broadcast %cst_7 : f32 to vector<2x512xf32>
    %12 = arith.select %10, %8, %11 : vector<2x512xi1>, vector<2x512xf32>
    %13 = arith.subf %5, %6 : vector<2x512xf32>
    %14 = arith.mulf %13, %12 : vector<2x512xf32>
    %15 = math.absf %14 : vector<2x512xf32>
    %c0_8 = arith.constant 0 : index
    %c0_9 = arith.constant 0 : index
    %16 = vector.load %arg7[%c0_8, %c0_9] : memref<2x512xf32, #tpu.memory_space<vmem>>, vector<2x512xf32>
    %17 = arith.addf %16, %15 : vector<2x512xf32>
    %c0_10 = arith.constant 0 : index
    %c0_11 = arith.constant 0 : index
    %18 = vector.load %arg7[%c0_10, %c0_11] : memref<2x512xf32, #tpu.memory_space<vmem>>, vector<2x512xf32>
    tpu.vector_store %arg7[%c0_10, %c0_11], %17 {strides = array<i32>} : memref<2x512xf32, #tpu.memory_space<vmem>>, vector<2x512xf32>,
    %c0_i32_12 = arith.constant 0 : i32
    %19 = arith.cmpi eq, %arg1, %c0_i32_12 : i32
    %c0_i32_13 = arith.constant 0 : i32
    %20 = arith.cmpi eq, %arg2, %c0_i32_13 : i32
    %21 = arith.andi %19, %20 : i1
    %22 = arith.extui %21 : i1 to i32
    %c0_i32_14 = arith.constant 0 : i32
    %23 = arith.cmpi ne, %22, %c0_i32_14 : i32
    scf.if %23 {
      %c0_15 = arith.constant 0 : index
      %c0_16 = arith.constant 0 : index
      %24 = vector.load %arg7[%c0_15, %c0_16] : memref<2x512xf32, #tpu.memory_space<vmem>>, vector<2x512xf32>
      %25 = vector.shape_cast %24 : vector<2x512xf32> to vector<1x2x512xf32>
      %cst_17 = arith.constant dense<0.000000e+00> : vector<1xf32>
      %26 = vector.multi_reduction <add>, %25, %cst_17 [1, 2] : vector<1x2x512xf32> to vector<1xf32>
      %27 = vector.shape_cast %26 : vector<1xf32> to vector<1x1x1xf32>
      %28 = vector.extract %27[0, 0, 0] : f32 from vector<1x1x1xf32>
      %cst_18 = arith.constant 9.765625E-4 : f32
      %29 = arith.mulf %28, %cst_18 : f32
      %30 = vector.broadcast %29 : f32 to vector<1x8x128xf32>
      %c0_19 = arith.constant 0 : index
      %c0_20 = arith.constant 0 : index
      %c0_21 = arith.constant 0 : index
      %31 = vector.load %arg6[%c0_19, %c0_20, %c0_21] : memref<1x8x128xf32, #tpu.memory_space<vmem>>, vector<1x8x128xf32>
      tpu.vector_store %arg6[%c0_19, %c0_20, %c0_21], %30 {strides = array<i32>} : memref<1x8x128xf32, #tpu.memory_space<vmem>>, vector<1x8x128xf32>,
    } else {
    }
    return
  }
  func.func @transform_0(%arg0: i32, %arg1: i32, %arg2: i32) -> (i32, i32) {
    %c1_i32 = arith.constant 1 : i32
    %0 = arith.muli %arg0, %c1_i32 : i32
    %1 = arith.addi %0, %arg1 : i32
    %c0_i32 = arith.constant 0 : i32
    %2 = arith.minsi %1, %c0_i32 : i32
    %c0_i32_0 = arith.constant 0 : i32
    return %2, %arg2 : i32, i32
  }
  func.func @transform_1(%arg0: i32, %arg1: i32, %arg2: i32) -> (i32, i32) {
    %c1_i32 = arith.constant 1 : i32
    %0 = arith.muli %arg0, %c1_i32 : i32
    %1 = arith.addi %0, %arg1 : i32
    %c0_i32 = arith.constant 0 : i32
    %2 = arith.minsi %1, %c0_i32 : i32
    %c0_i32_0 = arith.constant 0 : i32
    return %2, %arg2 : i32, i32
  }
  func.func @transform_2(%arg0: i32, %arg1: i32, %arg2: i32) -> (i32, i32) {
    %c1_i32 = arith.constant 1 : i32
    %0 = arith.muli %arg0, %c1_i32 : i32
    %1 = arith.addi %0, %arg1 : i32
    %c0_i32 = arith.constant 0 : i32
    %2 = arith.minsi %1, %c0_i32 : i32
    %c0_i32_0 = arith.constant 0 : i32
    return %2, %arg2 : i32, i32
  }
  func.func @transform_3(%arg0: i32, %arg1: i32, %arg2: i32) -> (i32, i32, i32) {
    %c0_i32 = arith.constant 0 : i32
    %c0_i32_0 = arith.constant 0 : i32
    %c0_i32_1 = arith.constant 0 : i32
    return %arg0, %c0_i32, %c0_i32_0 : i32, i32, i32
  }
}

</mosaic_0001>

<bundles_post_ra>
// kernel: tpu_custom_call.1
= control target key start
LH: loop header
LB: loop body
LE: loop exit
PB: predicated region body
PF: predicated region fallthrough
CT: control target
= control target key end

     0   :  { %8 = vsyncpa [#allocation4], 0  ;;  %s296_s0 = inlined_call_operand.hbm [shape: f32[2,512], index: 0, kind: input, shape index: {}]   ;;  %s297_s1 = inlined_call_operand.hbm [shape: f32[2,512], index: 1, kind: input, shape index: {}]   ;;  %s298_s2 = inlined_call_operand.hbm [shape: f32[2,512], index: 2, kind: input, shape index: {}]   ;;  %s299_s3 = inlined_call_operand.hbm [shape: f32[1,8,128], index: 3, kind: output, shape index: {}]  }
   0x1   :  { %9 = vsyncpa [#allocation7], 0 }
   0x2   :  { %10 = vsyncpa [#allocation5], 0  ;;  %s259_s12 = smov [#allocation6]   ;;  %s260_s14 = smov [#allocation3]  }
   0x3   :  { %s39_s13 = sshll.u32 %s259_s12, 4  ;;  %s23_s15 = sshll.u32 %s260_s14, 4  ;;  %s40_s13 = int_to_ptr.vmem [resolvable:$true] %s39_s13  ;;  %s24_s15 = int_to_ptr.vmem [resolvable:$true] %s23_s15 }
   0x4   :  { %s181_s16 = scalar_lea.vmem %s40_s13, 128  ;;  %p186_p1 = scmp.lt.s32.totalorder %s40_s13, %s40_s13 }
   0x5   :  { %p182_p0 = scmp.ne.s32.totalorder %s40_s13, %s181_s16  ;;  %p187_p2 = scmp.lt.s32.totalorder %s181_s16, %s181_s16 }
   0x7   :  { %p188_p3 = por %p187_p2, %p186_p1 }
   0x9   :  { %p189_p4 = pnand %p188_p3, %p182_p0 }
   0xb   :  { %192 = shalt.err (!%p189_p4)
}
   0xc   :  { %42 = dma.hbm_to_vmem [thread:$0]  %s297_s1, 128, %s40_s13, [#allocation7]  }
   0xd   :  { %s201_s19 = scalar_lea.vmem %s24_s15, 128  ;;  %p206_p6 = scmp.lt.s32.totalorder %s24_s15, %s24_s15 }
   0xe   :  { %p202_p5 = scmp.ne.s32.totalorder %s24_s15, %s201_s19  ;;  %p207_p7 = scmp.lt.s32.totalorder %s201_s19, %s201_s19 }
  0x10   :  { %p208_p8 = por %p207_p7, %p206_p6 }
  0x12   :  { %p209_p9 = pnand %p208_p8, %p202_p5 }
  0x14   :  { %212 = shalt.err (!%p209_p9)
}
  0x15   :  { %26 = dma.hbm_to_vmem [thread:$0]  %s296_s0, 128, %s24_s15, [#allocation4]  }
  0x16   :  { %s261_s22 = smov [#allocation8]  }
  0x17   :  { %s55_s23 = sshll.u32 %s261_s22, 4  ;;  %s56_s23 = int_to_ptr.vmem [resolvable:$true] %s55_s23 }
  0x18   :  { %s221_s24 = scalar_lea.vmem %s56_s23, 128  ;;  %p226_p11 = scmp.lt.s32.totalorder %s56_s23, %s56_s23 }
  0x19   :  { %p222_p10 = scmp.ne.s32.totalorder %s56_s23, %s221_s24  ;;  %p227_p12 = scmp.lt.s32.totalorder %s221_s24, %s221_s24 }
  0x1b   :  { %p228_p13 = por %p227_p12, %p226_p11 }
  0x1d   :  { %p229_p0 = pnand %p228_p13, %p222_p10 }
  0x1f   :  { %232 = shalt.err (!%p229_p0)
}
  0x20   :  { %58 = dma.hbm_to_vmem [thread:$0]  %s298_s2, 128, %s56_s23, [#allocation7]  }
  0x21   :  { %253 = dma.done.wait [#allocation4], 128  }
  0x22   :  { %254 = vsyncadd [#allocation4], 4294967168 }
  0x23   :  { %255 = dma.done.wait [#allocation7], 256  }
  0x24   :  { %256 = vsyncadd [#allocation7], 4294967040  ;;  %v85_v0 = vld [vmem:[#allocation6] sm:$0xff]  ;;  %v262_v1 = vmov 1983009808   ;;  %v105_v3 = vlaneseq  ;;  %v84_v4 = vld [vmem:[#allocation3] sm:$0xff] }
  0x25   :  { %171 = vrcp.f32 %v85_v0  ;;  %v103_v2 = vunpack.c.l.s4 %v262_v1  ;;  %v86_v5 = vld [vmem:[#allocation8] sm:$0xff]  ;;  %v91_v8 = vsub.f32 %v84_v4, %v85_v0  ;;  %vm122_vm1 = vcmask 1041408   ;;  %s263_s0 = smov [#allocation9]  }
  0x26   :  { %v106_v10 = vshrl.u32 %v105_v3, 7  ;;  %s148_s2 = sshll.u32 %s263_s0, 4  ;;  %s149_s2 = int_to_ptr.vmem [resolvable:$true] %s148_s2 }
  0x27   :  { %v104_v9 = vunpack.c.0.s8 %v103_v2  ;;  %s233_s28 = scalar_lea.vmem %s149_s2, 128  ;;  %p238_p2 = scmp.lt.s32.totalorder %s149_s2, %s149_s2 }
  0x28   :  { %p234_p1 = scmp.ne.s32.totalorder %s149_s2, %s233_s28  ;;  %p239_p3 = scmp.lt.s32.totalorder %s233_s28, %s233_s28 }
  0x29   :  { %v107_v13 = vsub.s32 %v104_v9, %v106_v10 }
  0x2a   :  { %p240_p4 = por %p239_p3, %p238_p2 }
  0x2c   :  { %p241_p5 = pnand %p240_p4, %p234_p1 }
  0x32   :  { %v172_v6 = vpop.eup %171 }
  0x33   :  { %v88_v7 = vmul.f32 %v172_v6, %v86_v5 }
  0x35   :  { %vm89_vm0 = vcmp.lt.f32.partialorder %v88_v7, inf }
  0x36   :  { %v90_v11 = vsel %vm89_vm0, %v88_v7, 0.0 }
  0x37   :  { %v92_v12 = vmul.f32 %v91_v8, %v90_v11 }
  0x39   :  { %v93_v14 = vand.u32 2147483647, %v92_v12 }
  0x3b   :  { %v101_v15 = vcombine.high %v93_v14, %v93_v14  ;;  %v108_v16 = vrot.slane %v93_v14, %v107_v13 }
  0x3d   :  { %v115_v17 = vrot.slane %v101_v15, %v107_v13  ;;  %v116_v18 = vcombine.high %v108_v16, %v108_v16  ;;  %v123_v19 = vsel %vm122_vm1, %v108_v16, 0.0 }
  0x3f   :  { %v117_v20 = vcombine.high %v115_v17, %v115_v17  ;;  %v124_v21 = vsel %vm122_vm1, %v116_v18, 0.0  ;;  %v126_v22 = vsel %vm122_vm1, %v115_v17, 0.0 }
  0x40   :  { %v125_v23 = vadd.f32 %v124_v21, %v123_v19 }
  0x41   :  { %v128_v24 = vsel %vm122_vm1, %v117_v20, 0.0 }
  0x42   :  { %v127_v25 = vadd.f32 %v126_v22, %v125_v23 }
  0x44   :  { %v129_v26 = vadd.f32 %v128_v24, %v127_v25 }
  0x46   :  { %130 = vadd.xlane.f32.xlu0 %v129_v26 }
  0xcf   :  { %v131_v27 = vpop.xlane.xlu0 %130 }
  0xd0   :  { %v132_v28 = vrot.slane %v131_v27, 4 }
  0xd2   :  { %v133_v29 = vadd.f32 %v132_v28, %v131_v27 }
  0xd4   :  { %v134_v30 = vrot.slane %v133_v29, 2 }
  0xd6   :  { %v135_v31 = vadd.f32 %v134_v30, %v133_v29 }
  0xd8   :  { %v136_v32 = vrot.slane %v135_v31, 1 }
  0xda   :  { %v137_v33 = vadd.f32 %v136_v32, %v135_v31 }
  0xdc   :  { %164 = vpush %v137_v33 }
 0x10d   :  { %s165_s26 = spop %164 }
 0x10e   :  { %s139_s27 = smul.f32 0.0009765625, %s165_s26 }
 0x110   :  { %v140_v34 = vstv %s139_s27 }
 0x111   :  { %141 = vst [vmem:[#allocation9] sm:$0xff] %v140_v34 }
 0x112   :  { %244 = shalt.err (!%p241_p5)
}
 0x113   :  { %151 = dma.vmem_to_hbm [thread:$0]  %s149_s2, 128, %s299_s3, [#allocation5]  }
 0x114   :  { %257 = dma.done.wait [#allocation5], 128  }
 0x115   :  { %258 = vsyncadd [#allocation5], 4294967168 }
 0x116   :  { %155 = vsyncpa [#allocation4], 1 }
 0x117   :  { %156 = vsyncpa [#allocation7], 1 }
 0x118   :  { %157 = vsyncpa [#allocation5], 1 }

</bundles_post_ra>
